<compile_context>
chip_gen: v6e
topology: v6e:2x2x1
jax: 0.10.0
libtpu: 0.0.40
codegen_flags: <defaults>
</compile_context>

<pallas_src>
import functools

import jax
import jax.numpy as jnp
from jax.experimental import pallas as pl
from jax.experimental.pallas import tpu as pltpu

_INV_SQRT2 = 0.7071067811865476
_AS_P = 0.3275911  # Abramowitz & Stegun 7.1.26 rational constant


def _belu_kernel(x_ref, o_ref, *, t):
    x = x_ref[...].astype(jnp.float32)
    # clamp(gelu(x), 0, t) == min(gelu(relu(x)), t):
    #   gelu(x) <= 0 for x <= 0, so relu-ing the input first is equivalent to
    #   the lower clamp and lets the erf path assume z >= 0 (no abs/where,
    #   and the A&S pole at z ≈ -3.05 is unreachable).
    xr = jnp.maximum(x, 0.0)
    z = xr * _INV_SQRT2

    # tt = 1 / (1 + p*z): approximate reciprocal on the EUP (free-ish slot)
    # plus one Newton step on the VALU — cheaper than a full divide, and the
    # Newton refinement keeps relative error ~O(seed_err^2), far below the
    # 1e-5 tolerance of the erf polynomial itself.
    d = 1.0 + _AS_P * z
    r = pl.reciprocal(d, approx=True)
    tt = r * (2.0 - d * r)

    # A&S 7.1.26 with the GELU 0.5 factor folded into the coefficients:
    #   erf(z)  = 1 - poly(tt) * exp(-z^2)             (z >= 0)
    #   gelu(xr)= 0.5*xr*(1+erf(z)) = xr*(1 - 0.5*poly(tt)*exp(-z^2))
    poly_half = tt * (0.127414796
                      + tt * (-0.142248368
                              + tt * (0.7107068705
                                      + tt * (-0.7265760135
                                              + tt * 0.5307027145))))
    g = xr * (1.0 - poly_half * jnp.exp(-z * z))

    # Only the upper clamp remains.
    o_ref[...] = jnp.minimum(g, t).astype(o_ref.dtype)


def _chip_defaults():
    """(block_bytes, vmem_limit_bytes) per TPU generation.

    v6e/v7x: 4 MiB blocks (32 MiB scoped-VMEM default on both; do NOT size
             off physical VMEM — v7x has only 64 MiB per TC).
    v5e/v5p: 2 MiB blocks (~85% of v5e HBM roofline per tile sweeps; 4 MiB
             would hit v5e's 16 MiB scoped default once double-buffered).
    unknown: 2 MiB blocks, compiler-default VMEM limit (proven-safe setup).
    """
    try:
        kind = jax.devices()[0].device_kind.lower()
    except Exception:  # pragma: no cover - no device visible at trace time
        kind = ""
    if "v6" in kind or "v7" in kind:
        bb = 4 * 1024 * 1024
        # 2 arrays x 2 pipeline buffers (~4*bb) + ~6 f32 block temporaries
        # (~6*bb) + headroom; well under 64 MiB physical on v7x.
        return bb, 10 * bb + (2 << 20)
    if "v5" in kind:
        bb = 2 * 1024 * 1024
        return bb, 10 * bb + (2 << 20)
    return 2 * 1024 * 1024, None


def _belu_2d(x2d, t, block_bytes, vmem_limit_bytes):
    rows, lanes = x2d.shape
    dtype = x2d.dtype
    itemsize = jnp.dtype(dtype).itemsize
    # Native packed sublane tile height: 8 (f32), 16 (bf16), 32 (int8/fp8).
    sublane_pack = max(8, 32 // itemsize)

    # Tile sized by its *f32 working set* (kernel computes in f32), so bf16
    # and f32 inputs have the same VMEM temporary footprint.
    tr = max(sublane_pack,
             (block_bytes // (lanes * 4)) // sublane_pack * sublane_pack)
    if tr >= rows:
        if rows > 2 * sublane_pack:
            # Never collapse to grid=(1,) for non-trivial inputs: split into
            # >=2 blocks so the "parallel" axis can be sharded across both
            # v7x TensorCores (no effect on single-TC v5e/v6e).
            tr = pl.cdiv(pl.cdiv(rows, 2), sublane_pack) * sublane_pack
        else:
            tr = rows  # full-extent block (always layout-legal)
    grid = (pl.cdiv(rows, tr),)

    kernel = functools.partial(_belu_kernel, t=float(t))

    return pl.pallas_call(
        kernel,
        out_shape=jax.ShapeDtypeStruct((rows, lanes), dtype),
        grid_spec=pltpu.PrefetchScalarGridSpec(
            num_scalar_prefetch=0,
            grid=grid,
            in_specs=[pl.BlockSpec((tr, lanes), lambda i: (i, 0))],
            out_specs=pl.BlockSpec((tr, lanes), lambda i: (i, 0)),
        ),
        compiler_params=pltpu.CompilerParams(
            dimension_semantics=("parallel",),
            vmem_limit_bytes=vmem_limit_bytes,
        ),
    )(x2d)


def belu(x, t=6.0, block_bytes=None, vmem_limit_bytes=None):
    """Elementwise clamp(gelu(x), 0, t). Any shape; preserves shape/dtype."""
    orig_shape = x.shape
    dtype = x.dtype
    total = x.size
    if total == 0:
        return x

    if block_bytes is None or vmem_limit_bytes is None:
        bb, vl = _chip_defaults()
        block_bytes = block_bytes if block_bytes is not None else bb
        vmem_limit_bytes = vmem_limit_bytes if vmem_limit_bytes is not None else vl

    x_flat = x.reshape(-1)

    # Widest lane-dense slab that is a copy-free reshape of the flat array.
    lanes = None
    for cand in (1024, 512, 256, 128):
        if total % cand == 0:
            lanes = cand
            break

    if lanes is None:
        # Ragged size: run the kernel on the 128-aligned prefix and compute
        # the <128-element tail with plain jnp (avoids the pad+slice scheme
        # that roughly tripled HBM traffic for a mem-bound op).
        main = (total // 128) * 128
        tail = x_flat[main:]
        tail_out = jnp.clip(
            jax.nn.gelu(tail.astype(jnp.float32), approximate=False),
            0.0, float(t)).astype(dtype)
        if main == 0:
            return tail_out.reshape(orig_shape)
        head2d = x_flat[:main].reshape(main // 128, 128)
        head_out = _belu_2d(head2d, t, block_bytes, vmem_limit_bytes).reshape(-1)
        return jnp.concatenate([head_out, tail_out]).reshape(orig_shape)

    rows = total // lanes
    out2d = _belu_2d(x_flat.reshape(rows, lanes), t, block_bytes,
                     vmem_limit_bytes)
    return out2d.reshape(orig_shape)


if __name__ == "__main__":
    key = jax.random.PRNGKey(0)
    # Small NCHW input consistent with a conv-style activation.
    x = jax.random.normal(key, (2, 4, 16, 16), dtype=jnp.float32) * 5.0

    y = jax.block_until_ready(belu(x, t=6.0))

    # Reference mirrors torch: clamp(F.gelu(x), 0, 6) with exact-erf GELU.
    y_ref = jnp.clip(jax.nn.gelu(x, approximate=False), 0.0, 6.0)
    assert y.shape == x.shape and y.dtype == x.dtype
    # atol covers the A&S polynomial (~1.5e-7 erf err) plus the Newton-refined
    # approx reciprocal seed error.
    assert jnp.allclose(y, y_ref, atol=5e-5, rtol=1e-5), float(
        jnp.max(jnp.abs(y - y_ref)))

    # Non-multiple-of-128 size exercises the prefix + jnp-tail ragged path.
    x2 = jax.random.normal(jax.random.PRNGKey(1), (3, 50), dtype=jnp.float32) * 5.0
    y2 = jax.block_until_ready(belu(x2, t=6.0))
    y2_ref = jnp.clip(jax.nn.gelu(x2, approximate=False), 0.0, 6.0)
    assert y2.shape == x2.shape and y2.dtype == x2.dtype
    assert jnp.allclose(y2, y2_ref, atol=5e-5, rtol=1e-5), float(
        jnp.max(jnp.abs(y2 - y2_ref)))

    print("KERNEL_OK")
</pallas_src>

<mosaic_0001>
module attributes {stable_mosaic.version = 11 : i64} {
  func.func @_belu_kernel(%arg0: i32, %arg1: memref<2x1024xf32, #tpu.memory_space<vmem>>, %arg2: memref<2x1024xf32, #tpu.memory_space<vmem>>) attributes {dimension_semantics = [#tpu.dimension_semantics<parallel>], iteration_bounds = array<i64: 1>, scalar_prefetch = 0 : i64, scratch_operands = 0 : i64, tpu.core_type = #tpu.core_type<tc>, window_params = [{transform_indices = @transform_0, window_bounds = array<i64: 2, 1024>}, {transform_indices = @transform_1, window_bounds = array<i64: 2, 1024>}]} {
    %c0 = arith.constant 0 : index
    %c0_0 = arith.constant 0 : index
    %0 = vector.load %arg1[%c0, %c0_0] : memref<2x1024xf32, #tpu.memory_space<vmem>>, vector<2x1024xf32>
    %cst = arith.constant 0.000000e+00 : f32
    %1 = vector.broadcast %cst : f32 to vector<2x1024xf32>
    %2 = arith.maximumf %0, %1 : vector<2x1024xf32>
    %cst_1 = arith.constant 0.707106769 : f32
    %3 = vector.broadcast %cst_1 : f32 to vector<2x1024xf32>
    %4 = arith.mulf %2, %3 : vector<2x1024xf32>
    %cst_2 = arith.constant 0.327591091 : f32
    %5 = vector.broadcast %cst_2 : f32 to vector<2x1024xf32>
    %6 = arith.mulf %5, %4 : vector<2x1024xf32>
    %cst_3 = arith.constant 1.000000e+00 : f32
    %7 = vector.broadcast %cst_3 : f32 to vector<2x1024xf32>
    %8 = arith.addf %7, %6 : vector<2x1024xf32>
    %9 = tpu.reciprocal %8 {approx = true} : vector<2x1024xf32> -> vector<2x1024xf32>
    %10 = arith.mulf %8, %9 : vector<2x1024xf32>
    %cst_4 = arith.constant 2.000000e+00 : f32
    %11 = vector.broadcast %cst_4 : f32 to vector<2x1024xf32>
    %12 = arith.subf %11, %10 : vector<2x1024xf32>
    %13 = arith.mulf %9, %12 : vector<2x1024xf32>
    %cst_5 = arith.constant 0.53070271 : f32
    %14 = vector.broadcast %cst_5 : f32 to vector<2x1024xf32>
    %15 = arith.mulf %13, %14 : vector<2x1024xf32>
    %cst_6 = arith.constant -0.72657603 : f32
    %16 = vector.broadcast %cst_6 : f32 to vector<2x1024xf32>
    %17 = arith.addf %16, %15 : vector<2x1024xf32>
    %18 = arith.mulf %13, %17 : vector<2x1024xf32>
    %cst_7 = arith.constant 0.710706889 : f32
    %19 = vector.broadcast %cst_7 : f32 to vector<2x1024xf32>
    %20 = arith.addf %19, %18 : vector<2x1024xf32>
    %21 = arith.mulf %13, %20 : vector<2x1024xf32>
    %cst_8 = arith.constant -0.142248362 : f32
    %22 = vector.broadcast %cst_8 : f32 to vector<2x1024xf32>
    %23 = arith.addf %22, %21 : vector<2x1024xf32>
    %24 = arith.mulf %13, %23 : vector<2x1024xf32>
    %cst_9 = arith.constant 0.127414793 : f32
    %25 = vector.broadcast %cst_9 : f32 to vector<2x1024xf32>
    %26 = arith.addf %25, %24 : vector<2x1024xf32>
    %27 = arith.mulf %13, %26 : vector<2x1024xf32>
    %cst_10 = arith.constant 0.000000e+00 : f32
    %28 = vector.broadcast %cst_10 : f32 to vector<2x1024xf32>
    %29 = arith.subf %28, %4 : vector<2x1024xf32>
    %30 = arith.mulf %29, %4 : vector<2x1024xf32>
    %31 = math.exp %30 : vector<2x1024xf32>
    %32 = arith.mulf %27, %31 : vector<2x1024xf32>
    %cst_11 = arith.constant 1.000000e+00 : f32
    %33 = vector.broadcast %cst_11 : f32 to vector<2x1024xf32>
    %34 = arith.subf %33, %32 : vector<2x1024xf32>
    %35 = arith.mulf %2, %34 : vector<2x1024xf32>
    %cst_12 = arith.constant 6.000000e+00 : f32
    %36 = vector.broadcast %cst_12 : f32 to vector<2x1024xf32>
    %37 = arith.minimumf %35, %36 : vector<2x1024xf32>
    %c0_13 = arith.constant 0 : index
    %c0_14 = arith.constant 0 : index
    %38 = vector.load %arg2[%c0_13, %c0_14] : memref<2x1024xf32, #tpu.memory_space<vmem>>, vector<2x1024xf32>
    tpu.vector_store %arg2[%c0_13, %c0_14], %37 {strides = array<i32>} : memref<2x1024xf32, #tpu.memory_space<vmem>>, vector<2x1024xf32>,
    return
  }
  func.func @transform_0(%arg0: i32) -> (i32, i32) {
    %c0_i32 = arith.constant 0 : i32
    %c0_i32_0 = arith.constant 0 : i32
    return %arg0, %c0_i32 : i32, i32
  }
  func.func @transform_1(%arg0: i32) -> (i32, i32) {
    %c0_i32 = arith.constant 0 : i32
    %c0_i32_0 = arith.constant 0 : i32
    return %arg0, %c0_i32 : i32, i32
  }
}

</mosaic_0001>

<bundles_post_ra>
// kernel: tpu_custom_call.1
= control target key start
LH: loop header
LB: loop body
LE: loop exit
PB: predicated region body
PF: predicated region fallthrough
CT: control target
= control target key end

     0   :  { %6 = vsyncpa [#allocation3], 0  ;;  %s162_s0 = inlined_call_operand.hbm [shape: f32[2,1024], index: 0, kind: input, shape index: {}]   ;;  %s163_s1 = inlined_call_operand.hbm [shape: f32[2,1024], index: 1, kind: output, shape index: {}]  }
   0x1   :  { %7 = vsyncpa [#allocation4], 0  ;;  %s144_s6 = smov [#allocation2]  }
   0x2   :  { %s14_s7 = sshll.u32 %s144_s6, 4  ;;  %s15_s7 = int_to_ptr.vmem [resolvable:$true] %s14_s7 }
   0x3   :  { %s108_s8 = scalar_lea.vmem %s15_s7, 256  ;;  %p113_p1 = scmp.lt.s32.totalorder %s15_s7, %s15_s7 }
   0x4   :  { %p109_p0 = scmp.ne.s32.totalorder %s15_s7, %s108_s8  ;;  %p114_p2 = scmp.lt.s32.totalorder %s108_s8, %s108_s8 }
   0x6   :  { %p115_p3 = por %p114_p2, %p113_p1 }
   0x8   :  { %p116_p4 = pnand %p115_p3, %p109_p0 }
   0xa   :  { %119 = shalt.err (!%p116_p4)
}
   0xb   :  { %17 = dma.hbm_to_vmem [thread:$0]  %s162_s0, 256, %s15_s7, [#allocation3]  }
   0xc   :  { %140 = dma.done.wait [#allocation3], 256  }
   0xd   :  { %141 = vsyncadd [#allocation3], 4294967040  ;;  %v21_v0 = vld [vmem:[#allocation2] sm:$0xff]  ;;  %v22_v1 = vld [vmem:[#allocation2 + $0x8] sm:$0xff]  ;;  %s145_s0 = smov [#allocation5]  }
   0xe   :  { %v23_v2 = vmax.f32 %v21_v0, 0.0  ;;  %v24_v3 = vmax.f32 %v22_v1, 0.0  ;;  %s81_s11 = sshll.u32 %s145_s0, 4  ;;  %s82_s11 = int_to_ptr.vmem [resolvable:$true] %s81_s11 }
   0xf   :  { %s120_s12 = scalar_lea.vmem %s82_s11, 256  ;;  %p125_p6 = scmp.lt.s32.totalorder %s82_s11, %s82_s11 }
  0x10   :  { %v25_v4 = vmul.f32 0.70710677, %v23_v2  ;;  %v26_v5 = vmul.f32 0.70710677, %v24_v3  ;;  %p121_p5 = scmp.ne.s32.totalorder %s82_s11, %s120_s12  ;;  %p126_p7 = scmp.lt.s32.totalorder %s120_s12, %s120_s12 }
  0x12   :  { %v27_v6 = vmul.f32 0.3275911, %v25_v4  ;;  %v28_v7 = vmul.f32 0.3275911, %v26_v5  ;;  %v57_v10 = vsub.f32 0.0, %v25_v4  ;;  %v58_v11 = vsub.f32 0.0, %v26_v5  ;;  %p127_p8 = por %p126_p7, %p125_p6 }
  0x14   :  { %v29_v8 = vadd.f32 1.0, %v27_v6  ;;  %v30_v9 = vadd.f32 1.0, %v28_v7  ;;  %v59_v15 = vmul.f32 %v57_v10, %v25_v4  ;;  %v60_v17 = vmul.f32 %v58_v11, %v26_v5  ;;  %p128_p9 = pnand %p127_p8, %p121_p5 }
  0x16   :  { %92 = vrcp.f32 %v29_v8  ;;  %v61_v21 = vmul.f32 1.442695, %v59_v15  ;;  %v63_v23 = vmul.f32 1.442695, %v60_v17 }
  0x17   :  { %94 = vrcp.f32 %v30_v9 }
  0x18   :  { %96 = vpow2.f32 %v61_v21 }
  0x19   :  { %98 = vpow2.f32 %v63_v23 }
  0x23   :  { %v93_v12 = vpop.eup %92 }
  0x24   :  { %v95_v13 = vpop.eup %94  ;;  %v33_v14 = vmul.f32 %v93_v12, %v29_v8 }
  0x25   :  { %v34_v16 = vmul.f32 %v95_v13, %v30_v9  ;;  %v97_v39 = vpop.eup %96 }
  0x26   :  { %v35_v18 = vsub.f32 2.0, %v33_v14  ;;  %v99_v41 = vpop.eup %98 }
  0x27   :  { %v36_v19 = vsub.f32 2.0, %v34_v16 }
  0x28   :  { %v37_v20 = vmul.f32 %v93_v12, %v35_v18 }
  0x29   :  { %v38_v22 = vmul.f32 %v95_v13, %v36_v19 }
  0x2a   :  { %v39_v24 = vmul.f32 0.5307027, %v37_v20 }
  0x2b   :  { %v40_v25 = vmul.f32 0.5307027, %v38_v22 }
  0x2c   :  { %v41_v26 = vadd.f32 -0.72657603, %v39_v24 }
  0x2d   :  { %v42_v27 = vadd.f32 -0.72657603, %v40_v25 }
  0x2e   :  { %v43_v28 = vmul.f32 %v41_v26, %v37_v20 }
  0x2f   :  { %v44_v29 = vmul.f32 %v42_v27, %v38_v22 }
  0x30   :  { %v45_v30 = vadd.f32 0.7107069, %v43_v28 }
  0x31   :  { %v46_v31 = vadd.f32 0.7107069, %v44_v29 }
  0x32   :  { %v47_v32 = vmul.f32 %v45_v30, %v37_v20 }
  0x33   :  { %v48_v33 = vmul.f32 %v46_v31, %v38_v22 }
  0x34   :  { %v49_v34 = vadd.f32 -0.14224836, %v47_v32 }
  0x35   :  { %v50_v35 = vadd.f32 -0.14224836, %v48_v33 }
  0x36   :  { %v51_v36 = vmul.f32 %v49_v34, %v37_v20 }
  0x37   :  { %v52_v37 = vmul.f32 %v50_v35, %v38_v22 }
  0x38   :  { %v53_v38 = vadd.f32 0.1274148, %v51_v36 }
  0x39   :  { %v54_v40 = vadd.f32 0.1274148, %v52_v37 }
  0x3a   :  { %v55_v42 = vmul.f32 %v53_v38, %v37_v20 }
  0x3b   :  { %v56_v43 = vmul.f32 %v54_v40, %v38_v22 }
  0x3c   :  { %v65_v44 = vmul.f32 %v97_v39, %v55_v42 }
  0x3d   :  { %v66_v45 = vmul.f32 %v99_v41, %v56_v43 }
  0x3e   :  { %v67_v46 = vsub.f32 1.0, %v65_v44 }
  0x3f   :  { %v68_v47 = vsub.f32 1.0, %v66_v45 }
  0x40   :  { %v69_v48 = vmul.f32 %v67_v46, %v23_v2 }
  0x41   :  { %v70_v49 = vmul.f32 %v68_v47, %v24_v3 }
  0x42   :  { %v71_v50 = vmin.f32 %v69_v48, 6.0 }
  0x43   :  { %v72_v51 = vmin.f32 %v70_v49, 6.0 }
  0x44   :  { %73 = vst [vmem:[#allocation5] sm:$0xff] %v71_v50 }
  0x45   :  { %74 = vst [vmem:[#allocation5 + $0x8] sm:$0xff] %v72_v51 }
  0x46   :  { %131 = shalt.err (!%p128_p9)
}
  0x47   :  { %84 = dma.vmem_to_hbm [thread:$0]  %s82_s11, 256, %s163_s1, [#allocation4]  }
  0x48   :  { %142 = dma.done.wait [#allocation4], 256  }
  0x49   :  { %143 = vsyncadd [#allocation4], 4294967040 }
  0x4a   :  { %88 = vsyncpa [#allocation3], 1 }
  0x4b   :  { %89 = vsyncpa [#allocation4], 1 }

</bundles_post_ra>
